<compile_context>
chip_gen: v6e
topology: v6e:2x2x1
jax: 0.10.0
libtpu: 0.0.40
codegen_flags: <defaults>
</compile_context>

<pallas_src>
import functools

import jax
import jax.numpy as jnp
from jax.experimental import pallas as pl
from jax.experimental.pallas import tpu as pltpu


def _round_up(x, m):
    return (x + m - 1) // m * m


def _cap_for_two_tiles(tr, rows):
    """Guarantee >=2 grid steps when possible (v7x has 2 TCs; 'parallel' needs >=2 tiles)."""
    if rows > 8:
        tr = min(tr, _round_up((rows + 1) // 2, 8))
    return min(tr, _round_up(rows, 8))


def _choose_vq_tile(rows, feat, gkp, *, vmem_budget=20 * 1024 * 1024, cap=2048):
    """Row tile for the VQ pass. Budgets double-buffered I/O *and* the (TR, G*Kp) f32
    temporaries (dist / masked-lane / onehot) plus the resident block-diag codebook."""
    const_bytes = 4 * 2 * (2 * feat * gkp + gkp + feat * 128 + 128)      # codebook + cls_w
    per_row = 4 * (2 * (2 * feat + 128 + 8)      # dbl-buffered f in, zq/logits/ind out
                   + 6 * gkp                      # dist, where-mask, onehot, iota, slack
                   + 2 * feat + 256)              # zq/res temporaries, logits
    avail = max(vmem_budget - const_bytes, 8 * per_row)
    tr = max(8, min(cap, (avail // per_row) // 8 * 8))
    return max(8, _cap_for_two_tiles(tr, rows))


def _choose_mask_tile(rows, feat, *, vmem_budget=24 * 1024 * 1024, cap=8192):
    """Row tile for the pure-HBM-roofline mask pass: as big as comfortably fits."""
    per_row = 4 * (2 * (2 * feat + 1))            # dbl-buffered zq in, gate in, out
    tr = max(8, min(cap, (vmem_budget // per_row) // 8 * 8))
    return max(8, _cap_for_two_tiles(tr, rows))


def _vq_kernel(f_ref, e_dist_ref, esq_ref, emb_ref, clsw_ref,
               zq_ref, ind_ref, logits_ref, sse_ref,
               *, groups, kp, rows_total):
    pid = pl.program_id(0)
    f = f_ref[...]                                   # (TR, D) f32, D = groups * d
    tr = f.shape[0]

    # One big block-diagonal distance matmul: columns [g*Kp:(g+1)*Kp] hold
    # -2 * f_g @ E^T + ||E||^2 for group g (||f||^2 dropped: argmin-invariant).
    dist = jnp.dot(f, e_dist_ref[...], preferred_element_type=jnp.float32) + esq_ref[...]

    lane = jax.lax.broadcasted_iota(jnp.int32, (tr, kp), 1)
    onehot_parts = []
    ind_parts = []
    for g in range(groups):                          # static unroll; slices are 128-aligned
        dist_g = dist[:, g * kp:(g + 1) * kp]        # free lane-window slice (Kp % 128 == 0)
        min_d = jnp.min(dist_g, axis=1, keepdims=True)
        # first minimum -> same tie-break as torch (-dist).max(1)
        ind_g = jnp.min(jnp.where(dist_g <= min_d, lane, kp), axis=1, keepdims=True)
        onehot_parts.append((lane == ind_g).astype(jnp.float32))
        ind_parts.append(ind_g)
    onehot = jnp.concatenate(onehot_parts, axis=1)   # 128-aligned concat -> no repack

    # One gather matmul against the block-diag codebook -> lane-dense (TR, D) zq tile.
    zq = jnp.dot(onehot, emb_ref[...], preferred_element_type=jnp.float32)

    # Single SSE reduction per tile; NaN-safe masking of rows past the true row count
    # (edge blocks of an unpadded grid read unspecified data).
    row_ids = pid * tr + jax.lax.broadcasted_iota(jnp.int32, (tr, 1), 0)
    valid = row_ids < rows_total                     # (TR, 1) bool
    res = jnp.where(valid, zq - f, 0.0)
    sse = jnp.sum(res * res)

    zq_ref[...] = zq                                                         # lane-dense
    ind_ref[...] = jnp.concatenate(ind_parts, axis=1)                        # (TR, groups)
    # Per-row interaction-classifier logits (bias added after the batch mean in JAX):
    # avoids a second HBM read of the (R, D) z_q slab in the wrapper.
    logits_ref[...] = jnp.dot(zq, clsw_ref[...], preferred_element_type=jnp.float32)
    # per-tile SSE partial in a lane-padded block -> grid axis stays "parallel"
    sse_ref[...] = jnp.full((1, 1, 128), sse, jnp.float32)


def _mask_kernel(zq_ref, gate_ref, out_ref):
    # memory-bound: read z_q tile, multiply by per-row indicator, write back in place
    out_ref[...] = zq_ref[...] * gate_ref[...]


@functools.partial(jax.jit, static_argnames=("groups",))
def quantize_conditional_forward(z, embed_w, cls_w, cls_b, gumbel_noise, *, groups):
    """z: (B, N, D) f32; embed_w: (n_embed, D//groups); cls_w: (D, 2); cls_b: (1, 2);
    gumbel_noise: (N, 2) (one draw per time step, shared across batch, as in the module)."""
    B, N, D = z.shape
    assert D % groups == 0
    d = D // groups
    K = embed_w.shape[0]
    R = B * N
    Kp = _round_up(K, 128)              # lane-pad the codebook axis to the native lane width
    GKp = groups * Kp

    # ---- codebook prep hoisted out of the kernel (done once, block-diagonal layout) ----
    embed_f32 = embed_w.astype(jnp.float32)
    embed_pad = jnp.pad(embed_f32, ((0, Kp - K), (0, 0)))                # (Kp, d), pad rows 0
    eye_g = jnp.eye(groups, dtype=jnp.float32)
    e_dist_bd = jnp.kron(eye_g, (-2.0 * embed_pad).T)                    # (D, G*Kp)
    emb_bd = jnp.kron(eye_g, embed_pad)                                  # (G*Kp, D)
    esq_g = jnp.pad(jnp.sum(embed_f32 * embed_f32, axis=1),
                    (0, Kp - K), constant_values=1e30)                   # padded lanes never win
    esq_bd = jnp.tile(esq_g, groups)[None, :]                            # (1, G*Kp)
    clsw_pad = jnp.pad(cls_w.astype(jnp.float32),
                       ((0, 0), (0, 128 - cls_w.shape[1])))              # (D, 128), 2 live lanes

    flat = z.reshape(R, D).astype(jnp.float32)       # no row padding: rely on edge-block masking

    TR = _choose_vq_tile(R, D, GKp)
    num_tiles = pl.cdiv(R, TR)

    cparams = pltpu.CompilerParams(
        dimension_semantics=("parallel",),           # shards across TCs on v7x
        vmem_limit_bytes=48 * 1024 * 1024,           # <= 64 MiB physical on v7x
    )

    vq = functools.partial(_vq_kernel, groups=groups, kp=Kp, rows_total=R)
    zq, ind, logits_rows, sse_part = pl.pallas_call(
        vq,
        grid=(num_tiles,),
        out_shape=(jax.ShapeDtypeStruct((R, D), jnp.float32),
                   jax.ShapeDtypeStruct((R, groups), jnp.int32),
                   jax.ShapeDtypeStruct((R, 128), jnp.float32),
                   jax.ShapeDtypeStruct((num_tiles, 1, 128), jnp.float32)),
        in_specs=[pl.BlockSpec((TR, D), lambda i: (i, 0)),
                  pl.BlockSpec((D, GKp), lambda i: (0, 0)),
                  pl.BlockSpec((1, GKp), lambda i: (0, 0)),
                  pl.BlockSpec((GKp, D), lambda i: (0, 0)),
                  pl.BlockSpec((D, 128), lambda i: (0, 0))],
        out_specs=(pl.BlockSpec((TR, D), lambda i: (i, 0)),
                   pl.BlockSpec((TR, groups), lambda i: (i, 0)),
                   pl.BlockSpec((TR, 128), lambda i: (i, 0)),
                   pl.BlockSpec((1, 1, 128), lambda i: (i, 0, 0))),
        compiler_params=cparams,
    )(flat, e_dist_bd, esq_bd, emb_bd, clsw_pad)

    # diff = kld_scale * (0.25 * mse + mse); detach() only affects grads, not the value.
    sse = jnp.sum(sse_part[:, 0, 0])
    mse = sse / (R * D)
    diff = 10.0 * (0.25 * mse + mse)

    # ---- interaction gate: batch-mean of in-kernel per-row logits, + bias, + gumbel ----
    # classifier(mean_b(z_q)) == mean_b(classifier(z_q)) (linear commutes with the mean)
    logits_mean = jnp.mean(logits_rows[:, :2].reshape(B, N, 2), axis=0) + cls_b   # (N, 2)
    pert = logits_mean + gumbel_noise                                             # tau = 1.0
    indicator = (pert[:, 0:1] >= pert[:, 1:2]).astype(jnp.float32)                # hard class-0
    gate_rows = jnp.broadcast_to(indicator[None, :, :], (B, N, 1)).reshape(R, 1)

    # ---- z_q * indicator: tiled, pipelined, memory-bound pass, written in place ----
    TRm = _choose_mask_tile(R, D)
    zq_masked = pl.pallas_call(
        _mask_kernel,
        grid=(pl.cdiv(R, TRm),),
        out_shape=jax.ShapeDtypeStruct((R, D), jnp.float32),
        in_specs=[pl.BlockSpec((TRm, D), lambda i: (i, 0)),
                  pl.BlockSpec((TRm, 1), lambda i: (i, 0))],
        out_specs=pl.BlockSpec((TRm, D), lambda i: (i, 0)),
        compiler_params=cparams,
        input_output_aliases={0: 0},                 # overwrite z_q in place (no extra slab)
    )(zq, gate_rows)

    zq_out = zq_masked.reshape(B, N, D)   # straight-through forward value is z_q

    # torch: ind.reshape(B, N, g).view(N, B*g).view(N, B, g) is a raw, contiguous
    # reinterpretation of (b, n, g)-ordered data -- a raw reshape (NOT a transpose)
    # reproduces the module's returned index layout exactly.
    ind_out = ind.reshape(N, B, groups)
    return zq_out, diff, ind_out


if __name__ == "__main__":
    B, N, D = 2, 8, 32
    groups = 2
    n_embed = 16
    d = D // groups

    key = jax.random.PRNGKey(0)
    kz, ke, kw, kb, kg = jax.random.split(key, 5)

    # deterministic, in-script parameter init (shapes from __init__)
    z = jax.random.normal(kz, (B, N, D), dtype=jnp.float32)
    embed_w = jax.random.normal(ke, (n_embed, d), dtype=jnp.float32)      # nn.Embedding ~ N(0,1)
    lim = 1.0 / (D ** 0.5)                                                # nn.Linear default init
    cls_weight = jax.random.uniform(kw, (2, D), minval=-lim, maxval=lim, dtype=jnp.float32)
    cls_bias = jax.random.uniform(kb, (2,), minval=-lim, maxval=lim, dtype=jnp.float32)
    # F.gumbel_softmax noise: one independent (2,) draw per time step (fixed key)
    gumbel_noise = jax.random.gumbel(kg, (N, 2), dtype=jnp.float32)

    zq, diff, ind = quantize_conditional_forward(
        z, embed_w, cls_weight.T, cls_bias.reshape(1, 2), gumbel_noise, groups=groups)

    jax.block_until_ready((zq, diff, ind))
    assert zq.shape == (B, N, D) and ind.shape == (N, B, groups) and diff.shape == ()
    print("KERNEL_OK")
</pallas_src>

<mosaic_0001>
module attributes {stable_mosaic.version = 11 : i64} {
  func.func @_mask_kernel(%arg0: i32, %arg1: memref<8x32xf32, #tpu.memory_space<vmem>>, %arg2: memref<8x1xf32, #tpu.memory_space<vmem>>, %arg3: memref<8x32xf32, #tpu.memory_space<vmem>>) attributes {dimension_semantics = [#tpu.dimension_semantics<parallel>], iteration_bounds = array<i64: 2>, scalar_prefetch = 0 : i64, scratch_operands = 0 : i64, tpu.core_type = #tpu.core_type<tc>, window_params = [{transform_indices = @transform_0, window_bounds = array<i64: 8, 32>}, {transform_indices = @transform_1, window_bounds = array<i64: 8, 1>}, {transform_indices = @transform_2, window_bounds = array<i64: 8, 32>}]} {
    %c0 = arith.constant 0 : index
    %c0_0 = arith.constant 0 : index
    %0 = vector.load %arg1[%c0, %c0_0] : memref<8x32xf32, #tpu.memory_space<vmem>>, vector<8x32xf32>
    %c0_1 = arith.constant 0 : index
    %c0_2 = arith.constant 0 : index
    %1 = vector.load %arg2[%c0_1, %c0_2] : memref<8x1xf32, #tpu.memory_space<vmem>>, vector<8x1xf32>
    %2 = vector.broadcast %1 : vector<8x1xf32> to vector<8x32xf32>
    %3 = arith.mulf %0, %2 : vector<8x32xf32>
    %c0_3 = arith.constant 0 : index
    %c0_4 = arith.constant 0 : index
    %4 = vector.load %arg3[%c0_3, %c0_4] : memref<8x32xf32, #tpu.memory_space<vmem>>, vector<8x32xf32>
    tpu.vector_store %arg3[%c0_3, %c0_4], %3 {strides = array<i32>} : memref<8x32xf32, #tpu.memory_space<vmem>>, vector<8x32xf32>,
    return
  }
  func.func @transform_0(%arg0: i32) -> (i32, i32) {
    %c0_i32 = arith.constant 0 : i32
    %c0_i32_0 = arith.constant 0 : i32
    return %arg0, %c0_i32 : i32, i32
  }
  func.func @transform_1(%arg0: i32) -> (i32, i32) {
    %c0_i32 = arith.constant 0 : i32
    %c0_i32_0 = arith.constant 0 : i32
    return %arg0, %c0_i32 : i32, i32
  }
  func.func @transform_2(%arg0: i32) -> (i32, i32) {
    %c0_i32 = arith.constant 0 : i32
    %c0_i32_0 = arith.constant 0 : i32
    return %arg0, %c0_i32 : i32, i32
  }
}

module attributes {stable_mosaic.version = 11 : i64} {
  func.func @_vq_kernel(%arg0: i32, %arg1: memref<8x32xf32, #tpu.memory_space<vmem>>, %arg2: memref<32x256xf32, #tpu.memory_space<vmem>>, %arg3: memref<1x256xf32, #tpu.memory_space<vmem>>, %arg4: memref<256x32xf32, #tpu.memory_space<vmem>>, %arg5: memref<32x128xf32, #tpu.memory_space<vmem>>, %arg6: memref<8x32xf32, #tpu.memory_space<vmem>>, %arg7: memref<8x2xi32, #tpu.memory_space<vmem>>, %arg8: memref<8x128xf32, #tpu.memory_space<vmem>>, %arg9: memref<1x1x128xf32, #tpu.memory_space<vmem>>) attributes {dimension_semantics = [#tpu.dimension_semantics<parallel>], iteration_bounds = array<i64: 2>, scalar_prefetch = 0 : i64, scratch_operands = 0 : i64, tpu.core_type = #tpu.core_type<tc>, window_params = [{transform_indices = @transform_0, window_bounds = array<i64: 8, 32>}, {pipeline_mode = #tpu.pipeline_mode<synchronous>, transform_indices = @transform_1, window_bounds = array<i64: 32, 256>}, {pipeline_mode = #tpu.pipeline_mode<synchronous>, transform_indices = @transform_2, window_bounds = array<i64: 1, 256>}, {pipeline_mode = #tpu.pipeline_mode<synchronous>, transform_indices = @transform_3, window_bounds = array<i64: 256, 32>}, {pipeline_mode = #tpu.pipeline_mode<synchronous>, transform_indices = @transform_4, window_bounds = array<i64: 32, 128>}, {transform_indices = @transform_5, window_bounds = array<i64: 8, 32>}, {transform_indices = @transform_6, window_bounds = array<i64: 8, 2>}, {transform_indices = @transform_7, window_bounds = array<i64: 8, 128>}, {transform_indices = @transform_8, window_bounds = array<i64: 1, 1, 128>}]} {
    %c0 = arith.constant 0 : index
    %c0_0 = arith.constant 0 : index
    %0 = vector.load %arg1[%c0, %c0_0] : memref<8x32xf32, #tpu.memory_space<vmem>>, vector<8x32xf32>
    %c0_1 = arith.constant 0 : index
    %c0_2 = arith.constant 0 : index
    %1 = vector.load %arg2[%c0_1, %c0_2] : memref<32x256xf32, #tpu.memory_space<vmem>>, vector<32x256xf32>
    %cst = arith.constant dense<0.000000e+00> : vector<8x256xf32>
    %2 = tpu.matmul %0, %1, %cst {dimension_numbers = #tpu.dot_dimension_numbers<[1], [0], [0], [1], [0, 0, 1, 1], [], []>} : vector<8x32xf32>, vector<32x256xf32>, vector<8x256xf32> -> vector<8x256xf32>
    %c0_3 = arith.constant 0 : index
    %c0_4 = arith.constant 0 : index
    %3 = vector.load %arg3[%c0_3, %c0_4] : memref<1x256xf32, #tpu.memory_space<vmem>>, vector<1x256xf32>
    %4 = vector.broadcast %3 : vector<1x256xf32> to vector<8x256xf32>
    %5 = arith.addf %2, %4 : vector<8x256xf32>
    %6 = tpu.iota {dimensions = array<i32: 1>} : vector<8x128xi32>
    %7 = vector.extract_strided_slice %5 {offsets = [0, 0], sizes = [8, 128], strides = [1, 1]} : vector<8x256xf32> to vector<8x128xf32>
    %cst_5 = arith.constant dense<0x7F800000> : vector<8xf32>
    %8 = vector.multi_reduction <minimumf>, %7, %cst_5 [1] : vector<8x128xf32> to vector<8xf32>
    %9 = vector.shape_cast %8 : vector<8xf32> to vector<8x1xf32>
    %10 = vector.broadcast %9 : vector<8x1xf32> to vector<8x128xf32>
    %11 = arith.cmpf ole, %7, %10 : vector<8x128xf32>
    %c128_i32 = arith.constant 128 : i32
    %12 = vector.broadcast %c128_i32 : i32 to vector<8x128xi32>
    %13 = arith.select %11, %6, %12 : vector<8x128xi1>, vector<8x128xi32>
    %cst_6 = arith.constant dense<2147483647> : vector<8xi32>
    %14 = vector.multi_reduction <minsi>, %13, %cst_6 [1] : vector<8x128xi32> to vector<8xi32>
    %15 = vector.shape_cast %14 : vector<8xi32> to vector<8x1xi32>
    %16 = vector.broadcast %15 : vector<8x1xi32> to vector<8x128xi32>
    %17 = arith.cmpi eq, %6, %16 : vector<8x128xi32>
    %18 = arith.extui %17 : vector<8x128xi1> to vector<8x128xi32>
    %19 = arith.sitofp %18 : vector<8x128xi32> to vector<8x128xf32>
    %20 = vector.extract_strided_slice %5 {offsets = [0, 128], sizes = [8, 128], strides = [1, 1]} : vector<8x256xf32> to vector<8x128xf32>
    %cst_7 = arith.constant dense<0x7F800000> : vector<8xf32>
    %21 = vector.multi_reduction <minimumf>, %20, %cst_7 [1] : vector<8x128xf32> to vector<8xf32>
    %22 = vector.shape_cast %21 : vector<8xf32> to vector<8x1xf32>
    %23 = vector.broadcast %22 : vector<8x1xf32> to vector<8x128xf32>
    %24 = arith.cmpf ole, %20, %23 : vector<8x128xf32>
    %c128_i32_8 = arith.constant 128 : i32
    %25 = vector.broadcast %c128_i32_8 : i32 to vector<8x128xi32>
    %26 = arith.select %24, %6, %25 : vector<8x128xi1>, vector<8x128xi32>
    %cst_9 = arith.constant dense<2147483647> : vector<8xi32>
    %27 = vector.multi_reduction <minsi>, %26, %cst_9 [1] : vector<8x128xi32> to vector<8xi32>
    %28 = vector.shape_cast %27 : vector<8xi32> to vector<8x1xi32>
    %29 = vector.broadcast %28 : vector<8x1xi32> to vector<8x128xi32>
    %30 = arith.cmpi eq, %6, %29 : vector<8x128xi32>
    %31 = arith.extui %30 : vector<8x128xi1> to vector<8x128xi32>
    %32 = arith.sitofp %31 : vector<8x128xi32> to vector<8x128xf32>
    %33 = tpu.concatenate %19, %32 in 1 : vector<8x128xf32>, vector<8x128xf32> -> vector<8x256xf32>
    %c0_10 = arith.constant 0 : index
    %c0_11 = arith.constant 0 : index
    %34 = vector.load %arg4[%c0_10, %c0_11] : memref<256x32xf32, #tpu.memory_space<vmem>>, vector<256x32xf32>
    %cst_12 = arith.constant dense<0.000000e+00> : vector<8x32xf32>
    %35 = tpu.matmul %33, %34, %cst_12 {dimension_numbers = #tpu.dot_dimension_numbers<[1], [0], [0], [1], [0, 0, 1, 1], [], []>} : vector<8x256xf32>, vector<256x32xf32>, vector<8x32xf32> -> vector<8x32xf32>
    %c8_i32 = arith.constant 8 : i32
    %36 = arith.muli %arg0, %c8_i32 : i32
    %37 = tpu.iota {dimensions = array<i32: 0>} : vector<8x1xi32>
    %38 = vector.broadcast %36 : i32 to vector<8x1xi32>
    %39 = arith.addi %38, %37 : vector<8x1xi32>
    %c16_i32 = arith.constant 16 : i32
    %40 = vector.broadcast %c16_i32 : i32 to vector<8x1xi32>
    %41 = arith.cmpi slt, %39, %40 : vector<8x1xi32>
    %42 = arith.subf %35, %0 : vector<8x32xf32>
    %cst_13 = arith.constant 0.000000e+00 : f32
    %43 = vector.shape_cast %41 : vector<8x1xi1> to vector<8x1xi1>
    %44 = vector.broadcast %43 : vector<8x1xi1> to vector<8x32xi1>
    %45 = vector.broadcast %cst_13 : f32 to vector<8x32xf32>
    %46 = arith.select %44, %42, %45 : vector<8x32xi1>, vector<8x32xf32>
    %47 = arith.mulf %46, %46 : vector<8x32xf32>
    %48 = vector.shape_cast %47 : vector<8x32xf32> to vector<1x8x32xf32>
    %cst_14 = arith.constant dense<0.000000e+00> : vector<1xf32>
    %49 = vector.multi_reduction <add>, %48, %cst_14 [1, 2] : vector<1x8x32xf32> to vector<1xf32>
    %50 = vector.shape_cast %49 : vector<1xf32> to vector<1x1x1xf32>
    %51 = vector.extract %50[0, 0, 0] : f32 from vector<1x1x1xf32>
    %c0_15 = arith.constant 0 : index
    %c0_16 = arith.constant 0 : index
    %52 = vector.load %arg6[%c0_15, %c0_16] : memref<8x32xf32, #tpu.memory_space<vmem>>, vector<8x32xf32>
    tpu.vector_store %arg6[%c0_15, %c0_16], %35 {strides = array<i32>} : memref<8x32xf32, #tpu.memory_space<vmem>>, vector<8x32xf32>,
    %53 = tpu.concatenate %15, %28 in 1 : vector<8x1xi32>, vector<8x1xi32> -> vector<8x2xi32>
    %c0_17 = arith.constant 0 : index
    %c0_18 = arith.constant 0 : index
    %54 = vector.load %arg7[%c0_17, %c0_18] : memref<8x2xi32, #tpu.memory_space<vmem>>, vector<8x2xi32>
    tpu.vector_store %arg7[%c0_17, %c0_18], %53 {strides = array<i32>} : memref<8x2xi32, #tpu.memory_space<vmem>>, vector<8x2xi32>,
    %c0_19 = arith.constant 0 : index
    %c0_20 = arith.constant 0 : index
    %55 = vector.load %arg5[%c0_19, %c0_20] : memref<32x128xf32, #tpu.memory_space<vmem>>, vector<32x128xf32>
    %cst_21 = arith.constant dense<0.000000e+00> : vector<8x128xf32>
    %56 = tpu.matmul %35, %55, %cst_21 {dimension_numbers = #tpu.dot_dimension_numbers<[1], [0], [0], [1], [0, 0, 1, 1], [], []>} : vector<8x32xf32>, vector<32x128xf32>, vector<8x128xf32> -> vector<8x128xf32>
    %c0_22 = arith.constant 0 : index
    %c0_23 = arith.constant 0 : index
    %57 = vector.load %arg8[%c0_22, %c0_23] : memref<8x128xf32, #tpu.memory_space<vmem>>, vector<8x128xf32>
    tpu.vector_store %arg8[%c0_22, %c0_23], %56 {strides = array<i32>} : memref<8x128xf32, #tpu.memory_space<vmem>>, vector<8x128xf32>,
    %58 = vector.broadcast %51 : f32 to vector<1x1x128xf32>
    %c0_24 = arith.constant 0 : index
    %c0_25 = arith.constant 0 : index
    %c0_26 = arith.constant 0 : index
    %59 = vector.load %arg9[%c0_24, %c0_25, %c0_26] : memref<1x1x128xf32, #tpu.memory_space<vmem>>, vector<1x1x128xf32>
    tpu.vector_store %arg9[%c0_24, %c0_25, %c0_26], %58 {strides = array<i32>} : memref<1x1x128xf32, #tpu.memory_space<vmem>>, vector<1x1x128xf32>,
    return
  }
  func.func @transform_0(%arg0: i32) -> (i32, i32) {
    %c0_i32 = arith.constant 0 : i32
    %c0_i32_0 = arith.constant 0 : i32
    return %arg0, %c0_i32 : i32, i32
  }
  func.func @transform_1(%arg0: i32) -> (i32, i32) {
    %c0_i32 = arith.constant 0 : i32
    %c0_i32_0 = arith.constant 0 : i32
    %c0_i32_1 = arith.constant 0 : i32
    return %c0_i32, %c0_i32_0 : i32, i32
  }
  func.func @transform_2(%arg0: i32) -> (i32, i32) {
    %c0_i32 = arith.constant 0 : i32
    %c0_i32_0 = arith.constant 0 : i32
    %c0_i32_1 = arith.constant 0 : i32
    return %c0_i32, %c0_i32_0 : i32, i32
  }
  func.func @transform_3(%arg0: i32) -> (i32, i32) {
    %c0_i32 = arith.constant 0 : i32
    %c0_i32_0 = arith.constant 0 : i32
    %c0_i32_1 = arith.constant 0 : i32
    return %c0_i32, %c0_i32_0 : i32, i32
  }
  func.func @transform_4(%arg0: i32) -> (i32, i32) {
    %c0_i32 = arith.constant 0 : i32
    %c0_i32_0 = arith.constant 0 : i32
    %c0_i32_1 = arith.constant 0 : i32
    return %c0_i32, %c0_i32_0 : i32, i32
  }
  func.func @transform_5(%arg0: i32) -> (i32, i32) {
    %c0_i32 = arith.constant 0 : i32
    %c0_i32_0 = arith.constant 0 : i32
    return %arg0, %c0_i32 : i32, i32
  }
  func.func @transform_6(%arg0: i32) -> (i32, i32) {
    %c0_i32 = arith.constant 0 : i32
    %c0_i32_0 = arith.constant 0 : i32
    return %arg0, %c0_i32 : i32, i32
  }
  func.func @transform_7(%arg0: i32) -> (i32, i32) {
    %c0_i32 = arith.constant 0 : i32
    %c0_i32_0 = arith.constant 0 : i32
    return %arg0, %c0_i32 : i32, i32
  }
  func.func @transform_8(%arg0: i32) -> (i32, i32, i32) {
    %c0_i32 = arith.constant 0 : i32
    %c0_i32_0 = arith.constant 0 : i32
    %c0_i32_1 = arith.constant 0 : i32
    return %arg0, %c0_i32, %c0_i32_0 : i32, i32, i32
  }
}

</mosaic_0001>

<bundles_post_ra>
// kernel: tile.8
= control target key start
LH: loop header
LB: loop body
LE: loop exit
PB: predicated region body
PF: predicated region fallthrough
CT: control target
= control target key end

     0   :  { %s22_s0 = inlined_call_operand.vmem [shape: f32[128], index: 0, kind: input, shape index: {}]   ;;  %s23_s1 = inlined_call_operand.vmem [shape: f32[2,128], index: 1, kind: output, shape index: {}]  }
   0x1   :  { %v4_v0 = vld [vmem:[%s22_s0] ss:$0 sm:$0xff] }
   0x2   :  { %5 = vst [vmem:[%s23_s1] sm:$0x3] %v4_v0 }

// kernel: quantize_conditional_forward.3
= control target key start
LH: loop header
LB: loop body
LE: loop exit
PB: predicated region body
PF: predicated region fallthrough
CT: control target
= control target key end

     0   :  { %s255_s9 = smov 0   ;;  %s284_s0 = inlined_call_operand.vmem [shape: f32[16,32], index: 0, kind: input, shape index: {}, may-alias: {0,2}]   ;;  %s285_s1 = inlined_call_operand.vmem [shape: f32[16,1], index: 1, kind: input, shape index: {}]   ;;  %s286_s2 = inlined_call_operand.vmem [shape: f32[16,32], index: 2, kind: output, shape index: {}, may-alias: {0,2}]  }
   0x1 LB: > { %s231_s10 = sadd.s32 4294967295, %s257_s9   ;;  %p235_p0 = scmp.ge.s32.totalorder %s257_s9, 1  ;;  %s257_s9 = sphi %s255_s9, %s12_s9  }
   0x2   : > { %p120_p1 = scmp.lt.s32.totalorder %s257_s9, 3 }
   0x4   : > { %p121_p2 = pnand %p235_p0, %p120_p1 }
   0x5   : > { %p144_p3 = scmp.lt.s32.totalorder (!%p121_p2), %s231_s10, 1 }
   0x6   : > { %124 = sbr.rel (%p121_p2) target bundleno = 142 (0x8e), region = 28 }
   0xb   : > { %v259_v0 = vmov 0   ;;  %s288_s10 = smov (!%p144_p3, %s231_s10), 1  ;;  %vm164_vm0 = vcmask 261120  }
   0xc   : > { %250 = vset.pattern.permute.xlu0 %v259_v0  ;;  %s236_s11 = sshll.u32 %s288_s10, 3 }
   0xd   : > { %s151_s14 = scalar_lea.vmem %s285_s1, %s236_s11  ;;  %s147_s17 = scalar_lea.vmem %s284_s0, %s236_s11 }
   0xe   : > { %v157_v1 = vld [vmem:[%s151_s14] sm:$0xff]  ;;  %s155_s20 = scalar_lea.vmem %s286_s2, %s236_s11 }
   0xf   : > { %160 = vperm.xlu0 %250, %v157_v1   ;;  %v156_v2 = vld [vmem:[%s147_s17] sm:$0xff] }
  0x8a   : > { %v161_v3 = vpop.permute.xlu0 %160 }
  0x8b   : > { %v163_v4 = vmul.f32 %v161_v3, %v156_v2 }
  0x8d   : > { %165 = vst.msk [vmem:[%s155_s20] sm:$0xff] %vm164_vm0, %v163_v4 }
  0x8e PF: > { %s12_s9 = sadd.s32 1, %s257_s9  }
  0x8f   : > { %p9_p4 = scmp.ge.s32.totalorder %s12_s9, 4  }
  0x91   :  { %11 = sbr.rel (!%p9_p4) target bundleno = 1 (0x1), region = 61 }

// kernel: quantize_conditional_forward.2
= control target key start
LH: loop header
LB: loop body
LE: loop exit
PB: predicated region body
PF: predicated region fallthrough
CT: control target
= control target key end

     0   :  { %s956_s27 = smov 0   ;;  %s1157_s0 = inlined_call_operand.vmem [shape: f32[16,32], index: 0, kind: input, shape index: {}]   ;;  %s1158_s1 = inlined_call_operand.vmem [shape: f32[32,256], index: 1, kind: input, shape index: {}]   ;;  %s1159_s2 = inlined_call_operand.vmem [shape: f32[1,256], index: 2, kind: input, shape index: {}]   ;;  %s1160_s3 = inlined_call_operand.vmem [shape: f32[256,32], index: 3, kind: input, shape index: {}]   ;;  %s1161_s4 = inlined_call_operand.vmem [shape: f32[32,128], index: 4, kind: input, shape index: {}]   ;;  %s1162_s5 = inlined_call_operand.vmem [shape: f32[16,32], index: 5, kind: output, shape index: {0}]   ;;  %s1163_s6 = inlined_call_operand.vmem [shape: s32[16,2], index: 6, kind: output, shape index: {1}]   ;;  %s1164_s7 = inlined_call_operand.vmem [shape: f32[16,128], index: 7, kind: output, shape index: {2}]   ;;  %s1165_s8 = inlined_call_operand.vmem [shape: f32[2,1,128], index: 8, kind: output, shape index: {3}]  }
   0x1 LB: > { %s962_s28 = sadd.s32 4294967295, %s906_s27   ;;  %p822_p0 = scmp.ge.s32.totalorder %s906_s27, 1  ;;  %s906_s27 = sphi %s956_s27, %s19_s27  }
   0x2   : > { %p268_p1 = scmp.lt.s32.totalorder %s906_s27, 3 }
   0x4   : > { %p269_p2 = pnand %p822_p0, %p268_p1 }
   0x5   : > { %p311_p3 = scmp.lt.s32.totalorder (!%p269_p2), %s962_s28, 1  ;;  %s832_s13 = sshll.u32 (!%p269_p2), %s962_s28, 3 }
   0x6   : > { %272 = sbr.rel (%p269_p2) target bundleno = 1053 (0x41d), region = 40 }
   0xb   : > { %v338_v0 = vld [vmem:[%s1158_s1 + $0x38] sm:$0xff]  ;;  %v337_v1 = vld [vmem:[%s1158_s1 + $0x30] sm:$0xff]  ;;  %v336_v2 = vld [vmem:[%s1158_s1 + $0x28] sm:$0xff]  ;;  %v908_v4 = vmov 0.0   ;;  %s984_s17 = scalar_select %p311_p3, %s962_s28, 1  ;;  %vm351_vm0 = vcmask 261120   ;;  %v341_v10 = vlaneseq }
   0xc   : > { %379 = vmatprep.subr.mxu0 %v338_v0  ;;  %v335_v3 = vld [vmem:[%s1158_s1 + $0x20] sm:$0xff]  ;;  %419 = vmatprep.mubr.f32.mxu0 %v908_v4  ;;  %v334_v5 = vld [vmem:[%s1158_s1 + $0x18] sm:$0xff]  ;;  %v333_v6 = vld [vmem:[%s1158_s1 + $0x10] sm:$0xff]  ;;  %vm594_vm6 = vcmask 7168   ;;  %vm596_vm7 = vcmask 15360   ;;  %vm910_vm9 = vmmov 0  }
   0xd   : > { %380 = vmatpush1.msra.mxu0 %v337_v1  ;;  %v332_v7 = vld [vmem:[%s1158_s1 + $0x8] sm:$0xff]  ;;  %s993_s22 = sshll.u32 %s984_s17, 3  ;;  %v331_v8 = vld [vmem:[%s1158_s1] sm:$0xff]  ;;  %v1007_v11 = vshrl.u32 %v341_v10, 7  ;;  %v1014_v21 = vand.u32 127, %v341_v10  ;;  %v501_v30 = vld [vmem:[%s1160_s3 + $0xf8] sm:$0xff]  ;;  %s329_s23 = scalar_lea.vmem %s1165_s8, %s984_s17 }
   0xe   : > { %381 = vmatprep.subr.mxu0 %v336_v2  ;;  %s314_s29 = scalar_lea.vmem %s1157_s0, %s993_s22  ;;  %v339_v13 = vld [vmem:[%s1159_s2] sm:$0x3]  ;;  %v485_v31 = vld [vmem:[%s1160_s3 + $0x78] sm:$0xff]  ;;  %v500_v32 = vld [vmem:[%s1160_s3 + $0xf0] sm:$0xff]  ;;  %836 = vmatprep.subr.mxu1 %v501_v30  ;;  %s322_s26 = scalar_lea.vmem %s1163_s6, %s993_s22 }
   0xf   : > { %382 = vmatpush1.msra.mxu0 %v335_v3  ;;  %v1002_v9 = vld [vmem:[%s314_s29] sm:$0xff]  ;;  %v347_v12 = vsub.s32 1, %v1007_v11  ;;  %v343_v14 = vsub.s32 0, %v1007_v11  ;;  %v484_v33 = vld [vmem:[%s1160_s3 + $0x70] sm:$0xff]  ;;  %837 = vmatpush3.msra.mxu1 %v485_v31  ;;  %v499_v34 = vld [vmem:[%s1160_s3 + $0xe8] sm:$0xff]  ;;  %s318_s16 = scalar_lea.vmem %s1162_s5, %s993_s22  ;;  %s326_s19 = scalar_lea.vmem %s1164_s7, %s993_s22 }
  0x10   : > { %383 = vmatprep.subr.mxu0 %v334_v5  ;;  %838 = vmatprep.subr.mxu1 %v500_v32  ;;  %v483_v35 = vld [vmem:[%s1160_s3 + $0x68] sm:$0xff]  ;;  %v498_v36 = vld [vmem:[%s1160_s3 + $0xe0] sm:$0xff]  ;;  %v497_v38 = vld [vmem:[%s1160_s3 + $0xd8] sm:$0xff] }
  0x11   : > { %384 = vmatpush1.msra.mxu0 %v333_v6  ;;  %v348_v15 = vrot.slane %v339_v13, %v347_v12  ;;  %v344_v18 = vrot.slane %v339_v13, %v343_v14  ;;  %839 = vmatpush3.msra.mxu1 %v484_v33  ;;  %v482_v37 = vld [vmem:[%s1160_s3 + $0x60] sm:$0xff]  ;;  %v481_v39 = vld [vmem:[%s1160_s3 + $0x58] sm:$0xff]  ;;  %v496_v40 = vld [vmem:[%s1160_s3 + $0xd0] sm:$0xff] }
  0x12   : > { %385 = vmatprep.subr.mxu0 %v332_v7  ;;  %840 = vmatprep.subr.mxu1 %v499_v34  ;;  %v480_v41 = vld [vmem:[%s1160_s3 + $0x50] sm:$0xff]  ;;  %v495_v42 = vld [vmem:[%s1160_s3 + $0xc8] sm:$0xff]  ;;  %v494_v44 = vld [vmem:[%s1160_s3 + $0xc0] sm:$0xff] }
  0x13   : > { %386 = vmatpush1.msra.mxu0 %v331_v8  ;;  %841 = vmatpush3.msra.mxu1 %v483_v35  ;;  %v479_v43 = vld [vmem:[%s1160_s3 + $0x48] sm:$0xff]  ;;  %v478_v45 = vld [vmem:[%s1160_s3 + $0x40] sm:$0xff]  ;;  %v493_v46 = vld [vmem:[%s1160_s3 + $0xb8] sm:$0xff] }
  0x14   : > { %827 = vmatmul.mubr.msk.f32.vlgmr.msra.gmra.mxu0 %vm351_vm0, %v1002_v9  ;;  %876 = vmatprep.subr.mxu0 %v908_v4  ;;  %v477_v47 = vld [vmem:[%s1160_s3 + $0x38] sm:$0xff]  ;;  %v492_v48 = vld [vmem:[%s1160_s3 + $0xb0] sm:$0xff]  ;;  %v491_v50 = vld [vmem:[%s1160_s3 + $0xa8] sm:$0xff] }
  0x15   : > { %842 = vmatprep.subr.mxu1 %v498_v36  ;;  %v476_v49 = vld [vmem:[%s1160_s3 + $0x30] sm:$0xff]  ;;  %v475_v51 = vld [vmem:[%s1160_s3 + $0x28] sm:$0xff]  ;;  %v490_v52 = vld [vmem:[%s1160_s3 + $0xa0] sm:$0xff]  ;;  %884 = vmatprep.mubr.msk.f32.mxu0 %vm910_vm9, %v908_v4 }
  0x16   : > { %843 = vmatpush3.msra.mxu1 %v482_v37  ;;  %v474_v61 = vld [vmem:[%s1160_s3 + $0x20] sm:$0xff]  ;;  %v489_v62 = vld [vmem:[%s1160_s3 + $0x98] sm:$0xff]  ;;  %v488_v0 = vld [vmem:[%s1160_s3 + $0x90] sm:$0xff] }
  0x17   : > { %844 = vmatprep.subr.mxu1 %v497_v38  ;;  %v473_v63 = vld [vmem:[%s1160_s3 + $0x18] sm:$0xff]  ;;  %v472_v1 = vld [vmem:[%s1160_s3 + $0x10] sm:$0xff]  ;;  %v487_v2 = vld [vmem:[%s1160_s3 + $0x88] sm:$0xff] }
  0x18   : > { %845 = vmatpush3.msra.mxu1 %v481_v39  ;;  %v471_v3 = vld [vmem:[%s1160_s3 + $0x8] sm:$0xff]  ;;  %v486_v5 = vld [vmem:[%s1160_s3 + $0x80] sm:$0xff]  ;;  %v601_v7 = vld [vmem:[%s1161_s4 + $0x18] sm:$0xff] }
  0x19   : > { %846 = vmatprep.subr.mxu1 %v496_v40  ;;  %v470_v6 = vld [vmem:[%s1160_s3] sm:$0xff]  ;;  %877 = vmatpush3.msra.mxu0 %v601_v7 }
  0x1a   : > { %847 = vmatpush3.msra.mxu1 %v480_v41  ;;  %878 = vmatprep.subr.mxu0 %v908_v4 }
  0x1b   : > { %848 = vmatprep.subr.mxu1 %v495_v42 }
  0x1c   : > { %849 = vmatpush3.msra.mxu1 %v479_v43 }
  0x1d   : > { %850 = vmatprep.subr.mxu1 %v494_v44 }
  0x1e   : > { %851 = vmatpush3.msra.mxu1 %v478_v45 }
  0x1f   : > { %852 = vmatprep.subr.mxu1 %v493_v46 }
  0x20   : > { %853 = vmatpush3.msra.mxu1 %v477_v47 }
  0x21   : > { %854 = vmatprep.subr.mxu1 %v492_v48 }
  0x22   : > { %855 = vmatpush3.msra.mxu1 %v476_v49 }
  0x23   : > { %856 = vmatprep.subr.mxu1 %v491_v50 }
  0x24   : > { %857 = vmatpush3.msra.mxu1 %v475_v51 }
  0x25   : > { %858 = vmatprep.subr.mxu1 %v490_v52 }
  0x26   : > { %859 = vmatpush3.msra.mxu1 %v474_v61 }
  0x27   : > { %860 = vmatprep.subr.mxu1 %v489_v62 }
  0x28   : > { %861 = vmatpush3.msra.mxu1 %v473_v63 }
  0x29   : > { %862 = vmatprep.subr.mxu1 %v488_v0 }
  0x2a   : > { %863 = vmatpush3.msra.mxu1 %v472_v1 }
  0x2b   : > { %864 = vmatprep.subr.mxu1 %v487_v2 }
  0x2c   : > { %865 = vmatpush3.msra.mxu1 %v471_v3 }
  0x2d   : > { %866 = vmatprep.subr.mxu1 %v486_v5 }
  0x2e   : > { %867 = vmatpush3.msra.mxu1 %v470_v6 }
  0xd4   : > { %v421_v16 = vpop.f32.mrf.mxu0 }
  0xd5   : > { %v422_v20 = vadd.f32 %v421_v16, %v344_v18 }
  0xd6   : > { %v423_v17 = vpop.f32.mrf.mxu0 }
  0xd7   : > { %v424_v19 = vadd.f32 %v423_v17, %v348_v15 }
  0xd9   : > { %449 = vmin.xlane.f32.xlu0 %v424_v19 }
  0xdd   : > { %428 = vmin.xlane.f32.xlu0 %v422_v20 }
 0x162   : > { %v450_v22 = vpop.xlane.xlu0 %449 }
 0x163   : > { %vm451_vm1 = vcmp.le.f32.partialorder %v424_v19, %v450_v22  ;;  %v909_v19 = vmov 1.0  }
 0x164   : > { %v452_v23 = vsel %vm451_vm1, %v1014_v21, 128 }
 0x165   : > { %v454_v24 = vshra.s32 %v452_v23, 16  ;;  %v453_v53 = vand.u32 65535, %v452_v23  ;;  %v600_v23 = vld [vmem:[%s1161_s4 + $0x10] sm:$0xff] }
 0x166   : > { %v429_v25 = vpop.xlane.xlu0 %428  ;;  %879 = vmatpush3.msra.mxu0 %v600_v23 }
 0x167   : > { %vm430_vm2 = vcmp.le.f32.partialorder %v422_v20, %v429_v25  ;;  %v456_v26 = vcvt.s32.f32 %v454_v24  ;;  %v455_v56 = vcvt.s32.f32 %v453_v53  ;;  %880 = vmatprep.subr.mxu0 %v908_v4  ;;  %v599_v24 = vld [vmem:[%s1161_s4 + $0x8] sm:$0xff]  ;;  %v575_v25 = vstv %s832_s13 }
 0x168   : > { %v431_v27 = vsel %vm430_vm2, %v1014_v21, 128  ;;  %881 = vmatpush3.msra.mxu0 %v599_v24 }
 0x169   : > { %457 = vmin.xlane.f32.xlu1 %v456_v26  ;;  %v433_v28 = vshra.s32 %v431_v27, 16  ;;  %v432_v54 = vand.u32 65535, %v431_v27  ;;  %882 = vmatprep.subr.mxu0 %v908_v4  ;;  %v576_v27 = vadd.s32 %v575_v25, %v1007_v11 }
 0x16b   : > { %v435_v29 = vcvt.s32.f32 %v433_v28  ;;  %v434_v59 = vcvt.s32.f32 %v432_v54  ;;  %vm577_vm10 = vcmp.lt.s32.totalorder %v576_v27, 16 }
 0x16d   : > { %436 = vmin.xlane.f32.xlu1 %v435_v29 }
 0x1f2   : > { %v458_v55 = vpop.xlane.xlu1 %457 }
 0x1f3   : > { %vm459_vm3 = vcmp.eq.f32.partialorder %v456_v26, %v458_v55  ;;  %v464_v8 = vcvt.f32.s32 %v458_v55 }
 0x1f4   : > { %v460_v57 = vsel %vm459_vm3, %v455_v56, inf }
 0x1f5   : > { %461 = vmin.xlane.f32.xlu0 %v460_v57  ;;  %v465_v12 = vshll.u32 %v464_v8, 16 }
 0x1f6   : > { %v437_v58 = vpop.xlane.xlu1 %436 }
 0x1f7   : > { %vm438_vm4 = vcmp.eq.f32.partialorder %v435_v29, %v437_v58  ;;  %v443_v13 = vcvt.f32.s32 %v437_v58 }
 0x1f8   : > { %v439_v60 = vsel %vm438_vm4, %v434_v59, inf }
 0x1f9   : > { %440 = vmin.xlane.f32.xlu1 %v439_v60  ;;  %v444_v17 = vshll.u32 %v443_v13, 16 }
 0x27e   : > { %v462_v10 = vpop.xlane.xlu0 %461 }
 0x27f   : > { %v463_v14 = vcvt.f32.s32 %v462_v10 }
 0x281   : > { %v466_v15 = vadd.s32 %v465_v12, %v463_v14 }
 0x282   : > { %v441_v16 = vpop.xlane.xlu1 %440 }
 0x283   : > { %v442_v18 = vcvt.f32.s32 %v441_v16  ;;  %vm467_vm5 = vcmp.eq.s32.totalorder %v1014_v21, %v466_v15 }
 0x284   : > { %830 = vmatprep.mubr.msk.f32.mxu1 %vm467_vm5, %v909_v19 }
 0x285   : > { %v445_v20 = vadd.s32 %v444_v17, %v442_v18 }
 0x287   : > { %v595_v22 = vsel %vm594_vm6, %v445_v20, %v466_v15  ;;  %vm446_vm8 = vcmp.eq.s32.totalorder %v1014_v21, %v445_v20  ;;  %v598_v21 = vld [vmem:[%s1161_s4] sm:$0xff] }
 0x288   : > { %597 = vst.msk [vmem:[%s322_s26] sm:$0xff] %vm596_vm7, %v595_v22  ;;  %831 = vmatmul.mubr.msk.f32.vlgmr.msra.gmra.mxu1 %vm446_vm8, %v909_v19  ;;  %883 = vmatpush3.msra.mxu0 %v598_v21 }
 0x348   : > { %v868_v26 = vpop.f32.mrf.mxu1 }
 0x34a   : > { %v869_v28 = vpop.f32.mrf.mxu1 }
 0x34b   : > { %v870_v29 = vadd.f32 %v869_v28, %v868_v26 }
 0x34d   : > { %593 = vst.msk [vmem:[%s318_s16] sm:$0xff] %vm351_vm0, %v870_v29  ;;  %885 = vmatmul.mubr.msk.f32.vlgmr.msra.gmra.mxu0 %vm351_vm0, %v870_v29  ;;  %v578_v30 = vsub.f32 %v870_v29, %v1002_v9 }
 0x34f   : > { %v581_v4 = vsel %vm577_vm10, %v578_v30, 0.0 }
 0x350   : > { %v582_v31 = vmul.f32 %v581_v4, %v581_v4 }
 0x352   : > { %v583_v32 = vsel %vm351_vm0, %v582_v31, 0.0 }
 0x353   : > { %584 = vadd.xlane.f32.xlu0 %v583_v32 }
 0x3dc   : > { %v585_v11 = vpop.xlane.xlu0 %584 }
 0x3dd   : > { %v586_v33 = vrot.slane %v585_v11, 4 }
 0x3df   : > { %v587_v34 = vadd.f32 %v586_v33, %v585_v11 }
 0x3e1   : > { %v588_v35 = vrot.slane %v587_v34, 2 }
 0x3e3   : > { %v589_v36 = vadd.f32 %v588_v35, %v587_v34 }
 0x3e5   : > { %v590_v37 = vrot.slane %v589_v36, 1 }
 0x3e7   : > { %v591_v38 = vadd.f32 %v590_v37, %v589_v36 }
 0x3e9   : > { %887 = vpush %v591_v38 }
 0x40d   : > { %v671_v39 = vpop.f32.mrf.mxu0 }
 0x40e   : > { %675 = vst [vmem:[%s326_s19] sm:$0xff] %v671_v39 }
 0x40f   : > { %v886_v9 = vpop.f32.mrf.mxu0 }
 0x41a   : > { %s888_s24 = spop %887 }
 0x41b   : > { %v676_v40 = vstv %s888_s24 }
 0x41c   : > { %677 = vst [vmem:[%s329_s23] sm:$0x1] %v676_v40 }
 0x41d PF: > { %s19_s27 = sadd.s32 1, %s906_s27  }
 0x41e   : > { %p16_p4 = scmp.ge.s32.totalorder %s19_s27, 4  }
 0x420   :  { %18 = sbr.rel (!%p16_p4) target bundleno = 1 (0x1), region = 106 }

</bundles_post_ra>
